<compile_context>
chip_gen: v7x
topology: tpu7x:2x2x1
jax: 0.10.0
libtpu: 0.0.40
codegen_flags: <defaults>
</compile_context>

<pallas_src>
import functools

import jax
import jax.numpy as jnp
from jax.experimental import pallas as pl
from jax.experimental.pallas import tpu as pltpu

NEG_SLOPE = 0.01   # nn.LeakyReLU default
LN_EPS = 1e-5      # nn.LayerNorm default


def _leaky_relu(x):
    # NEG_SLOPE < 1, so max(x, a*x) == leaky_relu(x); 2 VALU ops instead of 3.
    return jnp.maximum(x, NEG_SLOPE * x)


def _round_up(n, m):
    return ((n + m - 1) // m) * m


def residual_block_kernel(x_ref, w1_ref, b1_ref, w2_ref, b2_ref,
                          gamma_ref, beta_ref, o_ref, *, matmul_dtype=None):
    x = x_ref[...]                                                    # [TB, F]

    # ---- Linear(F, 2F) + LeakyReLU (MXU, f32 accumulation) ----
    if matmul_dtype is None:
        a, w1 = x, w1_ref[...]
    else:
        a, w1 = x.astype(matmul_dtype), w1_ref[...].astype(matmul_dtype)
    h = jnp.dot(a, w1, preferred_element_type=jnp.float32)           # [TB, 2F]
    h = _leaky_relu(h + b1_ref[...].astype(jnp.float32))

    # Dropout(0.2): identity at inference (eval) time.
    # TODO(synk): training-mode dropout would need pltpu.prng_seed/prng_random_bits masking.

    # ---- Linear(2F, F) ----
    if matmul_dtype is None:
        h2, w2 = h.astype(w2_ref.dtype), w2_ref[...]
    else:
        h2, w2 = h.astype(matmul_dtype), w2_ref[...].astype(matmul_dtype)
    out = jnp.dot(h2, w2, preferred_element_type=jnp.float32)        # [TB, F]
    out = out + b2_ref[...].astype(jnp.float32)

    # ---- residual add ----
    out = out + x.astype(jnp.float32)

    # ---- LayerNorm over the true feature width (no padding -> no masking) ----
    mean = jnp.mean(out, axis=-1, keepdims=True)
    centered = out - mean
    var = jnp.mean(centered * centered, axis=-1, keepdims=True)
    normed = centered * jax.lax.rsqrt(var + LN_EPS)
    normed = normed * gamma_ref[...].astype(jnp.float32) + beta_ref[...].astype(jnp.float32)

    # ---- final LeakyReLU ----
    o_ref[...] = _leaky_relu(normed).astype(o_ref.dtype)


def prepare_params(w1, b1, w2, b2, gamma, beta):
    """One-time parameter prep (hoisted out of the per-call path)."""
    return (w1,
            b1.reshape(1, -1),
            w2,
            b2.reshape(1, -1),
            gamma.reshape(1, -1),
            beta.reshape(1, -1))


@functools.partial(jax.jit, static_argnames=("block_b", "matmul_dtype"))
def residual_block(x, params, *, block_b=1024, matmul_dtype=None):
    """x: [B, F]; params from prepare_params(w1[F,2F], b1[2F], w2[2F,F], b2[F], gamma[F], beta[F])."""
    w1, b1, w2, b2, gamma, beta = params
    B, F = x.shape
    F2 = w1.shape[1]

    # Batch tile: large (amortize ~0.35us/step overhead) but capped so the grid
    # has >= 2 tiles whenever B allows (keeps v7x's second TensorCore busy).
    TB = min(_round_up(block_b, 8), _round_up(max(pl.cdiv(B, 2), 8), 8))
    TB = min(TB, _round_up(B, 8))
    grid = (pl.cdiv(B, TB),)   # partial last block is masked on write by Pallas

    itemsize = jnp.dtype(x.dtype).itemsize
    cost = pl.CostEstimate(
        flops=2 * B * F * F2 + 2 * B * F2 * F,                       # two matmuls
        transcendentals=B,                                           # one rsqrt per row
        bytes_accessed=(2 * B * F + 2 * F * F2 + F2 + 3 * F) * itemsize,
    )

    # VMEM budget: single-buffered resident params + double-buffered x/out tiles
    # + f32 intermediates, with headroom; capped below v7x's 64 MiB physical VMEM.
    # TODO(synk): add a K-tiled (contraction-split) fallback with a VMEM f32
    # accumulator for very large F where resident weights would not fit 64 MiB.
    vmem_bytes = ((2 * F * F2 + F2 + 3 * F) * itemsize
                  + 2 * 2 * TB * F * itemsize
                  + (TB * F2 + 3 * TB * F) * 4)
    vmem_limit = int(min(max(2 * vmem_bytes + (4 << 20), 32 << 20), 48 << 20))

    resident = dict(pipeline_mode=pl.Buffered(1))   # constant index_map -> 1 buffer

    kernel = functools.partial(residual_block_kernel, matmul_dtype=matmul_dtype)

    return pl.pallas_call(
        kernel,
        out_shape=jax.ShapeDtypeStruct((B, F), x.dtype),
        grid=grid,
        in_specs=[
            pl.BlockSpec((TB, F), lambda i: (i, 0)),                 # x: streamed batch tiles
            pl.BlockSpec((F, F2), lambda i: (0, 0), **resident),     # w1 (resident)
            pl.BlockSpec((1, F2), lambda i: (0, 0), **resident),     # b1
            pl.BlockSpec((F2, F), lambda i: (0, 0), **resident),     # w2 (resident)
            pl.BlockSpec((1, F), lambda i: (0, 0), **resident),      # b2
            pl.BlockSpec((1, F), lambda i: (0, 0), **resident),      # gamma
            pl.BlockSpec((1, F), lambda i: (0, 0), **resident),      # beta
        ],
        out_specs=pl.BlockSpec((TB, F), lambda i: (i, 0)),
        compiler_params=pltpu.CompilerParams(
            dimension_semantics=("parallel",),     # batch tiles -> 2 TCs on v7x
            vmem_limit_bytes=vmem_limit,
        ),
        cost_estimate=cost,
    )(x, w1, b1, w2, b2, gamma, beta)


def reference(x, w1, b1, w2, b2, gamma, beta):
    h = jnp.where(x @ w1 + b1 >= 0, x @ w1 + b1, NEG_SLOPE * (x @ w1 + b1))
    out = h @ w2 + b2 + x
    mean = out.mean(-1, keepdims=True)
    var = ((out - mean) ** 2).mean(-1, keepdims=True)
    out = (out - mean) / jnp.sqrt(var + LN_EPS) * gamma + beta
    return jnp.where(out >= 0, out, NEG_SLOPE * out)


if __name__ == "__main__":
    # Small but non-trivial shapes: F=32 (< 128 lanes, unpadded path), batch
    # not a multiple of the tile -> partial last block, grid of 2 tiles.
    B, F = 200, 32
    key = jax.random.PRNGKey(0)
    kx, k1, k2, k3, k4 = jax.random.split(key, 5)

    x = jax.random.normal(kx, (B, F), dtype=jnp.float32)

    # Deterministic synthetic parameters (shapes per nn.Linear / nn.LayerNorm).
    w1 = jax.random.normal(k1, (F, 2 * F), dtype=jnp.float32) * (1.0 / jnp.sqrt(F))
    b1 = jax.random.normal(k2, (2 * F,), dtype=jnp.float32) * 0.01
    w2 = jax.random.normal(k3, (2 * F, F), dtype=jnp.float32) * (1.0 / jnp.sqrt(2 * F))
    b2 = jax.random.normal(k4, (F,), dtype=jnp.float32) * 0.01
    gamma = jnp.ones((F,), dtype=jnp.float32)   # LayerNorm weight init
    beta = jnp.zeros((F,), dtype=jnp.float32)   # LayerNorm bias init

    params = prepare_params(w1, b1, w2, b2, gamma, beta)   # one-time prep

    out = residual_block(x, params, block_b=128)
    out = jax.block_until_ready(out)

    ref = reference(x, w1, b1, w2, b2, gamma, beta)
    assert out.shape == (B, F)
    assert jnp.allclose(out, ref, atol=1e-4, rtol=1e-4), "mismatch vs JAX reference"

    print("KERNEL_OK")
</pallas_src>

<mosaic_0001>
module attributes {stable_mosaic.version = 11 : i64} {
  func.func @residual_block_kernel(%arg0: i32, %arg1: memref<104x32xf32, #tpu.memory_space<vmem>>, %arg2: memref<32x64xf32, #tpu.memory_space<vmem>>, %arg3: memref<1x64xf32, #tpu.memory_space<vmem>>, %arg4: memref<64x32xf32, #tpu.memory_space<vmem>>, %arg5: memref<1x32xf32, #tpu.memory_space<vmem>>, %arg6: memref<1x32xf32, #tpu.memory_space<vmem>>, %arg7: memref<1x32xf32, #tpu.memory_space<vmem>>, %arg8: memref<104x32xf32, #tpu.memory_space<vmem>>) attributes {dimension_semantics = [#tpu.dimension_semantics<parallel>], iteration_bounds = array<i64: 2>, scalar_prefetch = 0 : i64, scratch_operands = 0 : i64, tpu.core_type = #tpu.core_type<tc>, window_params = [{transform_indices = @transform_0, window_bounds = array<i64: 104, 32>}, {pipeline_mode = #tpu.pipeline_mode<synchronous>, transform_indices = @transform_1, window_bounds = array<i64: 32, 64>}, {pipeline_mode = #tpu.pipeline_mode<synchronous>, transform_indices = @transform_2, window_bounds = array<i64: 1, 64>}, {pipeline_mode = #tpu.pipeline_mode<synchronous>, transform_indices = @transform_3, window_bounds = array<i64: 64, 32>}, {pipeline_mode = #tpu.pipeline_mode<synchronous>, transform_indices = @transform_4, window_bounds = array<i64: 1, 32>}, {pipeline_mode = #tpu.pipeline_mode<synchronous>, transform_indices = @transform_5, window_bounds = array<i64: 1, 32>}, {pipeline_mode = #tpu.pipeline_mode<synchronous>, transform_indices = @transform_6, window_bounds = array<i64: 1, 32>}, {transform_indices = @transform_7, window_bounds = array<i64: 104, 32>}]} {
    %c0 = arith.constant 0 : index
    %c0_0 = arith.constant 0 : index
    %0 = vector.load %arg1[%c0, %c0_0] : memref<104x32xf32, #tpu.memory_space<vmem>>, vector<104x32xf32>
    %c0_1 = arith.constant 0 : index
    %c0_2 = arith.constant 0 : index
    %1 = vector.load %arg2[%c0_1, %c0_2] : memref<32x64xf32, #tpu.memory_space<vmem>>, vector<32x64xf32>
    %cst = arith.constant dense<0.000000e+00> : vector<104x64xf32>
    %2 = tpu.matmul %0, %1, %cst {dimension_numbers = #tpu.dot_dimension_numbers<[1], [0], [0], [1], [0, 0, 1, 1], [], []>} : vector<104x32xf32>, vector<32x64xf32>, vector<104x64xf32> -> vector<104x64xf32>
    %c0_3 = arith.constant 0 : index
    %c0_4 = arith.constant 0 : index
    %3 = vector.load %arg3[%c0_3, %c0_4] : memref<1x64xf32, #tpu.memory_space<vmem>>, vector<1x64xf32>
    %4 = vector.broadcast %3 : vector<1x64xf32> to vector<104x64xf32>
    %5 = arith.addf %2, %4 : vector<104x64xf32>
    %cst_5 = arith.constant 0.00999999977 : f32
    %6 = vector.broadcast %cst_5 : f32 to vector<104x64xf32>
    %7 = arith.mulf %6, %5 : vector<104x64xf32>
    %8 = arith.maximumf %5, %7 : vector<104x64xf32>
    %c0_6 = arith.constant 0 : index
    %c0_7 = arith.constant 0 : index
    %9 = vector.load %arg4[%c0_6, %c0_7] : memref<64x32xf32, #tpu.memory_space<vmem>>, vector<64x32xf32>
    %cst_8 = arith.constant dense<0.000000e+00> : vector<104x32xf32>
    %10 = tpu.matmul %8, %9, %cst_8 {dimension_numbers = #tpu.dot_dimension_numbers<[1], [0], [0], [1], [0, 0, 1, 1], [], []>} : vector<104x64xf32>, vector<64x32xf32>, vector<104x32xf32> -> vector<104x32xf32>
    %c0_9 = arith.constant 0 : index
    %c0_10 = arith.constant 0 : index
    %11 = vector.load %arg5[%c0_9, %c0_10] : memref<1x32xf32, #tpu.memory_space<vmem>>, vector<1x32xf32>
    %12 = vector.broadcast %11 : vector<1x32xf32> to vector<104x32xf32>
    %13 = arith.addf %10, %12 : vector<104x32xf32>
    %14 = arith.addf %13, %0 : vector<104x32xf32>
    %cst_11 = arith.constant dense<0.000000e+00> : vector<104xf32>
    %15 = vector.multi_reduction <add>, %14, %cst_11 [1] : vector<104x32xf32> to vector<104xf32>
    %16 = vector.shape_cast %15 : vector<104xf32> to vector<104x1xf32>
    %cst_12 = arith.constant 3.200000e+01 : f32
    %17 = vector.broadcast %cst_12 : f32 to vector<104x1xf32>
    %18 = arith.divf %16, %17 : vector<104x1xf32>
    %19 = vector.broadcast %18 : vector<104x1xf32> to vector<104x32xf32>
    %20 = arith.subf %14, %19 : vector<104x32xf32>
    %21 = arith.mulf %20, %20 : vector<104x32xf32>
    %cst_13 = arith.constant dense<0.000000e+00> : vector<104xf32>
    %22 = vector.multi_reduction <add>, %21, %cst_13 [1] : vector<104x32xf32> to vector<104xf32>
    %23 = vector.shape_cast %22 : vector<104xf32> to vector<104x1xf32>
    %cst_14 = arith.constant 3.200000e+01 : f32
    %24 = vector.broadcast %cst_14 : f32 to vector<104x1xf32>
    %25 = arith.divf %23, %24 : vector<104x1xf32>
    %cst_15 = arith.constant 9.99999974E-6 : f32
    %26 = vector.broadcast %cst_15 : f32 to vector<104x1xf32>
    %27 = arith.addf %25, %26 : vector<104x1xf32>
    %28 = math.rsqrt %27 : vector<104x1xf32>
    %29 = vector.broadcast %28 : vector<104x1xf32> to vector<104x32xf32>
    %30 = arith.mulf %20, %29 : vector<104x32xf32>
    %c0_16 = arith.constant 0 : index
    %c0_17 = arith.constant 0 : index
    %31 = vector.load %arg6[%c0_16, %c0_17] : memref<1x32xf32, #tpu.memory_space<vmem>>, vector<1x32xf32>
    %32 = vector.broadcast %31 : vector<1x32xf32> to vector<104x32xf32>
    %33 = arith.mulf %30, %32 : vector<104x32xf32>
    %c0_18 = arith.constant 0 : index
    %c0_19 = arith.constant 0 : index
    %34 = vector.load %arg7[%c0_18, %c0_19] : memref<1x32xf32, #tpu.memory_space<vmem>>, vector<1x32xf32>
    %35 = vector.broadcast %34 : vector<1x32xf32> to vector<104x32xf32>
    %36 = arith.addf %33, %35 : vector<104x32xf32>
    %cst_20 = arith.constant 0.00999999977 : f32
    %37 = vector.broadcast %cst_20 : f32 to vector<104x32xf32>
    %38 = arith.mulf %37, %36 : vector<104x32xf32>
    %39 = arith.maximumf %36, %38 : vector<104x32xf32>
    %c0_21 = arith.constant 0 : index
    %c0_22 = arith.constant 0 : index
    %40 = vector.load %arg8[%c0_21, %c0_22] : memref<104x32xf32, #tpu.memory_space<vmem>>, vector<104x32xf32>
    tpu.vector_store %arg8[%c0_21, %c0_22], %39 {strides = array<i32>} : memref<104x32xf32, #tpu.memory_space<vmem>>, vector<104x32xf32>,
    return
  }
  func.func @transform_0(%arg0: i32) -> (i32, i32) {
    %c0_i32 = arith.constant 0 : i32
    %c0_i32_0 = arith.constant 0 : i32
    return %arg0, %c0_i32 : i32, i32
  }
  func.func @transform_1(%arg0: i32) -> (i32, i32) {
    %c0_i32 = arith.constant 0 : i32
    %c0_i32_0 = arith.constant 0 : i32
    %c0_i32_1 = arith.constant 0 : i32
    return %c0_i32, %c0_i32_0 : i32, i32
  }
  func.func @transform_2(%arg0: i32) -> (i32, i32) {
    %c0_i32 = arith.constant 0 : i32
    %c0_i32_0 = arith.constant 0 : i32
    %c0_i32_1 = arith.constant 0 : i32
    return %c0_i32, %c0_i32_0 : i32, i32
  }
  func.func @transform_3(%arg0: i32) -> (i32, i32) {
    %c0_i32 = arith.constant 0 : i32
    %c0_i32_0 = arith.constant 0 : i32
    %c0_i32_1 = arith.constant 0 : i32
    return %c0_i32, %c0_i32_0 : i32, i32
  }
  func.func @transform_4(%arg0: i32) -> (i32, i32) {
    %c0_i32 = arith.constant 0 : i32
    %c0_i32_0 = arith.constant 0 : i32
    %c0_i32_1 = arith.constant 0 : i32
    return %c0_i32, %c0_i32_0 : i32, i32
  }
  func.func @transform_5(%arg0: i32) -> (i32, i32) {
    %c0_i32 = arith.constant 0 : i32
    %c0_i32_0 = arith.constant 0 : i32
    %c0_i32_1 = arith.constant 0 : i32
    return %c0_i32, %c0_i32_0 : i32, i32
  }
  func.func @transform_6(%arg0: i32) -> (i32, i32) {
    %c0_i32 = arith.constant 0 : i32
    %c0_i32_0 = arith.constant 0 : i32
    %c0_i32_1 = arith.constant 0 : i32
    return %c0_i32, %c0_i32_0 : i32, i32
  }
  func.func @transform_7(%arg0: i32) -> (i32, i32) {
    %c0_i32 = arith.constant 0 : i32
    %c0_i32_0 = arith.constant 0 : i32
    return %arg0, %c0_i32 : i32, i32
  }
}

</mosaic_0001>

<bundles_post_ra>
// kernel: residual_block.1
= control target key start
LH: loop header
LB: loop body
LE: loop exit
PB: predicated region body
PF: predicated region fallthrough
CT: control target
= control target key end

     0   :  { %s1700_s24 = smov 0   ;;  %s1702_s25 = smov 0   ;;  %s2261_s0 = inlined_call_operand.vmem [shape: f32[200,32], index: 0, kind: input, shape index: {}]   ;;  %s2262_s1 = inlined_call_operand.vmem [shape: f32[32,64], index: 1, kind: input, shape index: {}]   ;;  %s2263_s2 = inlined_call_operand.vmem [shape: f32[1,64], index: 2, kind: input, shape index: {}]   ;;  %s2264_s3 = inlined_call_operand.vmem [shape: f32[64,32], index: 3, kind: input, shape index: {}]   ;;  %s2265_s4 = inlined_call_operand.vmem [shape: f32[1,32], index: 4, kind: input, shape index: {}]   ;;  %s2266_s5 = inlined_call_operand.vmem [shape: f32[1,32], index: 5, kind: input, shape index: {}]   ;;  %s2267_s6 = inlined_call_operand.vmem [shape: f32[1,32], index: 6, kind: input, shape index: {}]   ;;  %s2268_s7 = inlined_call_operand.vmem [shape: f32[200,32], index: 7, kind: output, shape index: {}]  }
   0x1   :  { %s1704_s26 = smov 0  }
   0x2 LB: > { %s1713_s27 = sadd.s32 4294967295, %s1623_s26   ;;  %s1715_s28 = sadd.s32 1, %s1623_s26   ;;  %s1623_s26 = sphi %s1704_s26, %s2275_s26   ;;  %s1619_s25 = sphi %s1702_s25, %s2274_s25   ;;  %s1615_s24 = sphi %s1700_s24, %s2273_s24  }
   0x3   : > { %s173_s29 = ssub.s32 %s1623_s26, %s1715_s28  ;;  %s176_s30 = sadd.s32 1, %s1619_s25 }
   0x4   : > { %p174_p0 = scmp.eq.s32.totalorder %s173_s29, 0  ;;  %p186_p1 = scmp.ne.s32.totalorder %s1619_s25, %s1615_s24 }
   0x5   : > { %p187_p2 = scmp.eq.s32.totalorder %s1713_s27, 1  ;;  %p1235_p3 = scmp.ge.s32.totalorder %s1623_s26, 1 }
   0x6   : > { %s1723_s8 = scalar_select %p174_p0, %s1619_s25, %s176_s30  }
   0x7   : > { %p1725_p4 = por %p187_p2, %p186_p1  ;;  %p246_p5 = scmp.lt.s32.totalorder %s1623_s26, 3 }
   0x9   : > { %p247_p6 = pnand %p1235_p3, %p246_p5 }
   0xa   : > { %v313_v0 = vld [vmem:[%s2262_s1] sm:$0xff] (!%p247_p6)  ;;  %v314_v1 = vld [vmem:[%s2262_s1 + $0x8] sm:$0xff] (!%p247_p6)  ;;  %v315_v2 = vld [vmem:[%s2262_s1 + $0x10] sm:$0xff] (!%p247_p6)  ;;  %v1657_v3 = vmov (!%p247_p6), 0.0|0.0   ;;  %vm1658_vm0 = vmmov (!%p247_p6), 0   ;;  %v1659_v6 = vmov (!%p247_p6), 0.0  }
   0xb   : > { %250 = sbr.rel (%p247_p6) target bundleno = 884 (0x374), region = 48  ;;  %1420 = vmatprep.subr.bf16.mxu0 (!%p247_p6), %v1657_v3  ;;  %v1421_v4 = vpack.c.bf16 (!%p247_p6), %v314_v1, %v313_v0  ;;  %v316_v5 = vld [vmem:[%s2262_s1 + $0x18] sm:$0xff] (!%p247_p6)  ;;  %1326 = vmatprep.mubr.msk.f32.mxu0 (!%p247_p6), %vm1658_vm0, %v1659_v6  ;;  %v520_v7 = vld [vmem:[%s2264_s3] sm:$0xff] (!%p247_p6)  ;;  %v521_v8 = vld [vmem:[%s2264_s3 + $0x8] sm:$0xff] (!%p247_p6)  ;;  %vm324_vm1 = vcmask (!%p247_p6), 261120   ;;  %vm535_vm2 = vcmask (!%p247_p6), 523264  }
   0xc   : > { %s1745_s18 = smul.u32 (!%p247_p6), 13, %s1713_s27  ;;  %v1427_v9 = vpack.c.bf16 (!%p247_p6), %v521_v8, %v520_v7  ;;  %1438 = vmatprep.subr.bf16.mxu1 (!%p247_p6), %v1657_v3  ;;  %1384 = vmatprep.mubr.msk.f32.mxu1 (!%p247_p6), %vm1658_vm0, %v1659_v6  ;;  %v1424_v10 = vpack.c.bf16 (!%p247_p6), %v316_v5, %v315_v2  ;;  %v522_v11 = vld [vmem:[%s2264_s3 + $0x10] sm:$0xff] (!%p247_p6)  ;;  %v523_v12 = vld [vmem:[%s2264_s3 + $0x18] sm:$0xff] (!%p247_p6)  ;;  %v524_v27 = vld [vmem:[%s2264_s3 + $0x20] sm:$0xff] (!%p247_p6)  ;;  %s278_s13 = sand.u32 (!%p247_p6), 1, %s1615_s24  }
   0xd   : > { %1422 = vmatpush3.bf16.msra.mxu0 (!%p247_p6), %v1421_v4  ;;  %v1430_v13 = vpack.c.bf16 (!%p247_p6), %v523_v12, %v522_v11  ;;  %v525_v28 = vld [vmem:[%s2264_s3 + $0x28] sm:$0xff] (!%p247_p6)  ;;  %v526_v30 = vld [vmem:[%s2264_s3 + $0x30] sm:$0xff] (!%p247_p6)  ;;  %v527_v31 = vld [vmem:[%s2264_s3 + $0x38] sm:$0xff] (!%p247_p6)  ;;  %s1446_s16 = smul.u32 (!%p247_p6), 104, %s278_s13 }
   0xe   : > { %p286_p7 = scmp.lt.s32.totalorder (!%p247_p6), %s1745_s18, 24  ;;  %1423 = vmatprep.subr.bf16.mxu0 (!%p247_p6), %v1657_v3  ;;  %1442 = vmatpush3.bf16.msra.mxu1 (!%p247_p6), %v1427_v9  ;;  %v1433_v29 = vpack.c.bf16 (!%p247_p6), %v525_v28, %v524_v27  ;;  %v1436_v32 = vpack.c.bf16 (!%p247_p6), %v527_v31, %v526_v30  ;;  %v1883_v33 = vld [vmem:[%s2263_s2] ss:$0 sm:$0xff] (!%p247_p6) }
   0xf   : > { %1439 = vmatprep.subr.bf16.mxu1 (!%p247_p6), %v1657_v3  ;;  %s2112_s24 = scalar_lea.vmem (!%p247_p6), [#allocation2], %s1446_s16  }
  0x11   : > { %1425 = vmatpush3.bf16.msra.mxu0 (!%p247_p6), %v1424_v10 }
  0x12   : > { %s287_s10 = scalar_select %p286_p7, %s1745_s18, 24  ;;  %1426 = vmatprep.subr.bf16.mxu0 %v1657_v3  ;;  %1443 = vmatpush3.bf16.msra.mxu1 %v1430_v13 }
  0x13   : > { %1440 = vmatprep.subr.bf16.mxu1 %v1657_v3  ;;  %s975_s17 = ssub.s32 (%p1725_p4), 25, %s1745_s18  ;;  %s1279_s19 = smul.u32 (%p1725_p4), 104, %s1713_s27 }
  0x14   : > { %s1236_s11 = sshll.u32 %s287_s10, 3  ;;  %p976_p8 = scmp.lt.s32.totalorder (%p1725_p4), %s975_s17, 13 }
  0x15   : > { %s1769_s14 = scalar_lea.vmem %s2261_s0, %s1236_s11  ;;  %s2179_s22 = scalar_lea.vmem (%p1725_p4), %s2268_s7, %s1279_s19  }
  0x16   : > { %v1773_v14 = vld [vmem:[%s1769_s14] sm:$0xff]  ;;  %v1781_v15 = vld [vmem:[%s1769_s14 + $0x8] sm:$0xff]  ;;  %v1789_v16 = vld [vmem:[%s1769_s14 + $0x10] sm:$0xff]  ;;  %1444 = vmatpush3.bf16.msra.mxu1 %v1433_v29 }
  0x17   : > { %1327 = vmatmul.mubr.msk.f32.vlgmr.msra.gmra.mrb[0].mxu0 %vm324_vm1, %v1773_v14  ;;  %v1797_v17 = vld [vmem:[%s1769_s14 + $0x18] sm:$0xff]  ;;  %v1804_v18 = vld [vmem:[%s1769_s14 + $0x20] sm:$0xff]  ;;  %v1811_v19 = vld [vmem:[%s1769_s14 + $0x28] sm:$0xff]  ;;  %1441 = vmatprep.subr.bf16.mxu1 %v1657_v3 }
  0x18   : > { %1329 = vmatprep.mubr.msk.f32.mxu0 %vm1658_vm0, %v1659_v6  ;;  %1428 = vmatpush3.bf16.msra.mxu0 %v1427_v9  ;;  %v1818_v20 = vld [vmem:[%s1769_s14 + $0x30] sm:$0xff]  ;;  %v1825_v21 = vld [vmem:[%s1769_s14 + $0x38] sm:$0xff]  ;;  %v1832_v22 = vld [vmem:[%s1769_s14 + $0x40] sm:$0xff] }
  0x19   : > { %1429 = vmatprep.subr.bf16.mxu0 %v1657_v3  ;;  %v1839_v23 = vld [vmem:[%s1769_s14 + $0x48] sm:$0xff]  ;;  %v1846_v24 = vld [vmem:[%s1769_s14 + $0x50] sm:$0xff]  ;;  %v1853_v25 = vld [vmem:[%s1769_s14 + $0x58] sm:$0xff] }
  0x1a   : > { %v1860_v26 = vld [vmem:[%s1769_s14 + $0x60] sm:$0xff]  ;;  %1445 = vmatpush3.bf16.msra.mxu1 %v1436_v32 }
  0x1b   : > { %1330 = vmatmul.mubr.msk.f32.gmra.mrb[2].mxu0 %vm324_vm1, %v1781_v15 }
  0x1c   : > { %1332 = vmatprep.mubr.msk.f32.mxu0 %vm1658_vm0, %v1659_v6  ;;  %1431 = vmatpush3.bf16.msra.mxu0 %v1430_v13 }
  0x1d   : > { %1432 = vmatprep.subr.bf16.mxu0 %v1657_v3 }
  0x1f   : > { %1333 = vmatmul.mubr.msk.f32.gmra.mrb[4].mxu0 %vm324_vm1, %v1789_v16 }
  0x20   : > { %1335 = vmatprep.mubr.msk.f32.mxu0 %vm1658_vm0, %v1659_v6  ;;  %1434 = vmatpush3.bf16.msra.mxu0 %v1433_v29 }
  0x21   : > { %1435 = vmatprep.subr.bf16.mxu0 %v1657_v3 }
  0x23   : > { %1336 = vmatmul.mubr.msk.f32.gmra.mrb[6].mxu0 %vm324_vm1, %v1797_v17 }
  0x24   : > { %1338 = vmatprep.mubr.msk.f32.mxu0 %vm1658_vm0, %v1659_v6  ;;  %1437 = vmatpush3.bf16.msra.mxu0 %v1436_v32 }
  0x27   : > { %1339 = vmatmul.mubr.msk.f32.gmra.mrb[8].mxu0 %vm324_vm1, %v1804_v18 }
  0x28   : > { %1341 = vmatprep.mubr.msk.f32.mxu0 %vm1658_vm0, %v1659_v6 }
  0x2b   : > { %1342 = vmatmul.mubr.msk.f32.gmra.mrb[10].mxu0 %vm324_vm1, %v1811_v19 }
  0x2c   : > { %1344 = vmatprep.mubr.msk.f32.mxu0 %vm1658_vm0, %v1659_v6 }
  0x2f   : > { %1345 = vmatmul.mubr.msk.f32.gmra.mrb[12].mxu0 %vm324_vm1, %v1818_v20 }
  0x30   : > { %1347 = vmatprep.mubr.msk.f32.mxu0 %vm1658_vm0, %v1659_v6 }
  0x33   : > { %1348 = vmatmul.mubr.msk.f32.gmra.mrb[14].mxu0 %vm324_vm1, %v1825_v21 }
  0x34   : > { %1350 = vmatprep.mubr.msk.f32.mxu0 %vm1658_vm0, %v1659_v6 }
  0x37   : > { %1351 = vmatmul.mubr.msk.f32.gmra.mrb[16].mxu0 %vm324_vm1, %v1832_v22 }
  0x38   : > { %1353 = vmatprep.mubr.msk.f32.mxu0 %vm1658_vm0, %v1659_v6 }
  0x3b   : > { %1354 = vmatmul.mubr.msk.f32.gmra.mrb[18].mxu0 %vm324_vm1, %v1839_v23 }
  0x3c   : > { %1356 = vmatprep.mubr.msk.f32.mxu0 %vm1658_vm0, %v1659_v6 }
  0x3f   : > { %1357 = vmatmul.mubr.msk.f32.gmra.mrb[20].mxu0 %vm324_vm1, %v1846_v24 }
  0x40   : > { %1359 = vmatprep.mubr.msk.f32.mxu0 %vm1658_vm0, %v1659_v6 }
  0x43   : > { %1360 = vmatmul.mubr.msk.f32.gmra.mrb[22].mxu0 %vm324_vm1, %v1853_v25 }
  0x44   : > { %1362 = vmatprep.mubr.msk.f32.mxu0 %vm1658_vm0, %v1659_v6 }
  0x47   : > { %1363 = vmatmul.mubr.msk.f32.gmra.mrb[24].mxu0 %vm324_vm1, %v1860_v26 }
  0x48   : > { %1381 = vmatprep.mubr.msk.f32.mxu0 %vm1658_vm0, %v1659_v6 }
  0xea   : > { %v430_v34 = vpop.f32.mrb[0].mxu0 }
  0xeb   : > { %v431_v35 = vadd.f32 %v1883_v33, %v430_v34  ;;  %v1328_v36 = vpop.f32.mrb[1].mxu0 }
  0xed   : > { %v494_v37 = vmul.f32 0.01, %v431_v35 }
  0xee   : > { %v435_v38 = vpop.f32.mrb[2].mxu0 }
  0xef   : > { %v507_v39 = vmax.f32 %v431_v35, %v494_v37  ;;  %v436_v40 = vadd.f32 %v1883_v33, %v435_v38  ;;  %v1331_v41 = vpop.f32.mrb[3].mxu0 }
  0xf1   : > { %v495_v42 = vmul.f32 0.01, %v436_v40  ;;  %1382 = vmatmul.mubr.msk.f32.vlgmr.msra.gmra.mrb[26].mxu0 %vm535_vm2, %v507_v39 }
  0xf2   : > { %v440_v43 = vpop.f32.mrb[4].mxu0 }
  0xf3   : > { %v508_v44 = vmax.f32 %v436_v40, %v495_v42  ;;  %v441_v45 = vadd.f32 %v1883_v33, %v440_v43  ;;  %v1334_v46 = vpop.f32.mrb[5].mxu0 }
  0xf5   : > { %v496_v47 = vmul.f32 0.01, %v441_v45  ;;  %1385 = vmatmul.mubr.msk.f32.vlgmr.msra.gmra.mrb[0].mxu1 %vm535_vm2, %v508_v44 }
  0xf6   : > { %v445_v48 = vpop.f32.mrb[6].mxu0  ;;  %1387 = vmatprep.mubr.msk.f32.mxu1 %vm1658_vm0, %v1659_v6 }
  0xf7   : > { %v509_v49 = vmax.f32 %v441_v45, %v496_v47  ;;  %v446_v50 = vadd.f32 %v1883_v33, %v445_v48  ;;  %v1337_v51 = vpop.f32.mrb[7].mxu0 }
  0xf9   : > { %v497_v52 = vmul.f32 0.01, %v446_v50  ;;  %1388 = vmatmul.mubr.msk.f32.gmra.mrb[2].mxu1 %vm535_vm2, %v509_v49 }
  0xfa   : > { %v450_v53 = vpop.f32.mrb[8].mxu0  ;;  %1390 = vmatprep.mubr.msk.f32.mxu1 %vm1658_vm0, %v1659_v6 }
  0xfb   : > { %v510_v54 = vmax.f32 %v446_v50, %v497_v52  ;;  %v451_v55 = vadd.f32 %v1883_v33, %v450_v53  ;;  %v1340_v56 = vpop.f32.mrb[9].mxu0  ;;  %v1936_v50 = vld [vmem:[%s2265_s4] ss:$0 sm:$0xff] }
  0xfd   : > { %v498_v57 = vmul.f32 0.01, %v451_v55  ;;  %1391 = vmatmul.mubr.msk.f32.gmra.mrb[4].mxu1 %vm535_vm2, %v510_v54 }
  0xfe   : > { %v455_v58 = vpop.f32.mrb[10].mxu0  ;;  %1393 = vmatprep.mubr.msk.f32.mxu1 %vm1658_vm0, %v1659_v6 }
  0xff   : > { %v511_v59 = vmax.f32 %v451_v55, %v498_v57  ;;  %v456_v60 = vadd.f32 %v1883_v33, %v455_v58  ;;  %v1343_v61 = vpop.f32.mrb[11].mxu0 }
 0x101   : > { %v499_v62 = vmul.f32 0.01, %v456_v60  ;;  %1394 = vmatmul.mubr.msk.f32.gmra.mrb[6].mxu1 %vm535_vm2, %v511_v59 }
 0x102   : > { %v460_v63 = vpop.f32.mrb[12].mxu0  ;;  %1396 = vmatprep.mubr.msk.f32.mxu1 %vm1658_vm0, %v1659_v6 }
 0x103   : > { %v512_v0 = vmax.f32 %v456_v60, %v499_v62  ;;  %v461_v1 = vadd.f32 %v1883_v33, %v460_v63  ;;  %v1346_v2 = vpop.f32.mrb[13].mxu0 }
 0x105   : > { %v500_v3 = vmul.f32 0.01, %v461_v1  ;;  %1397 = vmatmul.mubr.msk.f32.gmra.mrb[8].mxu1 %vm535_vm2, %v512_v0 }
 0x106   : > { %v465_v4 = vpop.f32.mrb[14].mxu0  ;;  %1399 = vmatprep.mubr.msk.f32.mxu1 %vm1658_vm0, %v1659_v6 }
 0x107   : > { %v513_v5 = vmax.f32 %v461_v1, %v500_v3  ;;  %v466_v7 = vadd.f32 %v1883_v33, %v465_v4  ;;  %v1349_v8 = vpop.f32.mrb[15].mxu0 }
 0x109   : > { %v501_v9 = vmul.f32 0.01, %v466_v7  ;;  %1400 = vmatmul.mubr.msk.f32.gmra.mrb[10].mxu1 %vm535_vm2, %v513_v5 }
 0x10a   : > { %v470_v10 = vpop.f32.mrb[16].mxu0  ;;  %1402 = vmatprep.mubr.msk.f32.mxu1 %vm1658_vm0, %v1659_v6 }
 0x10b   : > { %v514_v11 = vmax.f32 %v466_v7, %v501_v9  ;;  %v471_v12 = vadd.f32 %v1883_v33, %v470_v10  ;;  %v1352_v13 = vpop.f32.mrb[17].mxu0 }
 0x10d   : > { %v502_v27 = vmul.f32 0.01, %v471_v12  ;;  %1403 = vmatmul.mubr.msk.f32.gmra.mrb[12].mxu1 %vm535_vm2, %v514_v11 }
 0x10e   : > { %v475_v28 = vpop.f32.mrb[18].mxu0  ;;  %1405 = vmatprep.mubr.msk.f32.mxu1 %vm1658_vm0, %v1659_v6 }
 0x10f   : > { %v515_v29 = vmax.f32 %v471_v12, %v502_v27  ;;  %v476_v30 = vadd.f32 %v1883_v33, %v475_v28  ;;  %v1355_v31 = vpop.f32.mrb[19].mxu0 }
 0x111   : > { %v503_v32 = vmul.f32 0.01, %v476_v30  ;;  %1406 = vmatmul.mubr.msk.f32.gmra.mrb[14].mxu1 %vm535_vm2, %v515_v29 }
 0x112   : > { %v480_v34 = vpop.f32.mrb[20].mxu0  ;;  %1408 = vmatprep.mubr.msk.f32.mxu1 %vm1658_vm0, %v1659_v6 }
 0x113   : > { %v516_v35 = vmax.f32 %v476_v30, %v503_v32  ;;  %v481_v36 = vadd.f32 %v1883_v33, %v480_v34  ;;  %v1358_v37 = vpop.f32.mrb[21].mxu0 }
 0x115   : > { %v504_v38 = vmul.f32 0.01, %v481_v36  ;;  %1409 = vmatmul.mubr.msk.f32.gmra.mrb[16].mxu1 %vm535_vm2, %v516_v35 }
 0x116   : > { %v485_v39 = vpop.f32.mrb[22].mxu0  ;;  %1411 = vmatprep.mubr.msk.f32.mxu1 %vm1658_vm0, %v1659_v6 }
 0x117   : > { %v517_v40 = vmax.f32 %v481_v36, %v504_v38  ;;  %v486_v41 = vadd.f32 %v1883_v33, %v485_v39  ;;  %v1361_v42 = vpop.f32.mrb[23].mxu0 }
 0x119   : > { %v505_v43 = vmul.f32 0.01, %v486_v41  ;;  %1412 = vmatmul.mubr.msk.f32.gmra.mrb[18].mxu1 %vm535_vm2, %v517_v40 }
 0x11a   : > { %v490_v44 = vpop.f32.mrb[24].mxu0  ;;  %1414 = vmatprep.mubr.msk.f32.mxu1 %vm1658_vm0, %v1659_v6 }
 0x11b   : > { %v518_v45 = vmax.f32 %v486_v41, %v505_v43  ;;  %v491_v46 = vadd.f32 %v1883_v33, %v490_v44  ;;  %v1364_v47 = vpop.f32.mrb[25].mxu0 }
 0x11d   : > { %v506_v48 = vmul.f32 0.01, %v491_v46  ;;  %1415 = vmatmul.mubr.msk.f32.gmra.mrb[20].mxu1 %vm535_vm2, %v518_v45 }
 0x11e   : > { %1417 = vmatprep.mubr.msk.f32.mxu1 %vm1658_vm0, %v1659_v6 }
 0x11f   : > { %v519_v49 = vmax.f32 %v491_v46, %v506_v48 }
 0x121   : > { %1418 = vmatmul.mubr.msk.f32.gmra.mrb[22].mxu1 %vm535_vm2, %v519_v49 }
 0x1c4   : > { %v641_v51 = vpop.f32.mrb[26].mxu0 }
 0x1c5   : > { %v642_v52 = vadd.f32 %v1936_v50, %v641_v51  ;;  %v1383_v53 = vpop.f32.mrb[27].mxu0 }
 0x1c7   : > { %v1940_v33 = vadd.f32 %v642_v52, %v1773_v14 }
 0x1c8   : > { %v646_v54 = vpop.f32.mrb[0].mxu1 }
 0x1c9   : > { %v647_v55 = vadd.f32 %v1936_v50, %v646_v54  ;;  %v1386_v56 = vpop.f32.mrb[1].mxu1  ;;  %v718_v6 = vsel %vm324_vm1, %v1940_v33, 0.0 }
 0x1ca   : > { %719 = vadd.xlane.f32.xlu0 %v718_v6 }
 0x1cb   : > { %v1946_v57 = vadd.f32 %v647_v55, %v1781_v15 }
 0x1cc   : > { %v651_v58 = vpop.f32.mrb[2].mxu1 }
 0x1cd   : > { %v652_v59 = vadd.f32 %v1936_v50, %v651_v58  ;;  %v1389_v60 = vpop.f32.mrb[3].mxu1  ;;  %v721_v61 = vsel %vm324_vm1, %v1946_v57, 0.0 }
 0x1ce   : > { %722 = vadd.xlane.f32.xlu0 %v721_v61 }
 0x1cf   : > { %v1952_v14 = vadd.f32 %v652_v59, %v1789_v16 }
 0x1d0   : > { %v656_v62 = vpop.f32.mrb[4].mxu1 }
 0x1d1   : > { %v657_v63 = vadd.f32 %v1936_v50, %v656_v62  ;;  %v1392_v0 = vpop.f32.mrb[5].mxu1  ;;  %v724_v1 = vsel %vm324_vm1, %v1952_v14, 0.0 }
 0x1d2   : > { %725 = vadd.xlane.f32.xlu1 %v724_v1 }
 0x1d3   : > { %v1958_v15 = vadd.f32 %v657_v63, %v1797_v17 }
 0x1d4   : > { %v661_v2 = vpop.f32.mrb[6].mxu1 }
 0x1d5   : > { %v662_v3 = vadd.f32 %v1936_v50, %v661_v2  ;;  %v1395_v4 = vpop.f32.mrb[7].mxu1  ;;  %v727_v5 = vsel %vm324_vm1, %v1958_v15, 0.0 }
 0x1d6   : > { %728 = vadd.xlane.f32.xlu1 %v727_v5 }
 0x1d7   : > { %v1964_v16 = vadd.f32 %v662_v3, %v1804_v18 }
 0x1d8   : > { %v666_v7 = vpop.f32.mrb[8].mxu1 }
 0x1d9   : > { %v667_v8 = vadd.f32 %v1936_v50, %v666_v7  ;;  %v1398_v9 = vpop.f32.mrb[9].mxu1  ;;  %v730_v10 = vsel %vm324_vm1, %v1964_v16, 0.0 }
 0x1da   : > { %731 = vadd.xlane.f32.xlu0 %v730_v10 }
 0x1db   : > { %v1970_v17 = vadd.f32 %v667_v8, %v1811_v19 }
 0x1dc   : > { %v671_v11 = vpop.f32.mrb[10].mxu1 }
 0x1dd   : > { %v672_v12 = vadd.f32 %v1936_v50, %v671_v11  ;;  %v1401_v13 = vpop.f32.mrb[11].mxu1  ;;  %v733_v27 = vsel %vm324_vm1, %v1970_v17, 0.0 }
 0x1de   : > { %734 = vadd.xlane.f32.xlu1 %v733_v27 }
 0x1df   : > { %v1976_v18 = vadd.f32 %v672_v12, %v1818_v20 }
 0x1e0   : > { %v676_v28 = vpop.f32.mrb[12].mxu1 }
 0x1e1   : > { %v677_v29 = vadd.f32 %v1936_v50, %v676_v28  ;;  %v1404_v30 = vpop.f32.mrb[13].mxu1  ;;  %v736_v31 = vsel %vm324_vm1, %v1976_v18, 0.0 }
 0x1e2   : > { %737 = vadd.xlane.f32.xlu0 %v736_v31 }
 0x1e3   : > { %v1982_v19 = vadd.f32 %v677_v29, %v1825_v21 }
 0x1e4   : > { %v681_v32 = vpop.f32.mrb[14].mxu1 }
 0x1e5   : > { %v682_v34 = vadd.f32 %v1936_v50, %v681_v32  ;;  %v1407_v35 = vpop.f32.mrb[15].mxu1  ;;  %v739_v36 = vsel %vm324_vm1, %v1982_v19, 0.0 }
 0x1e6   : > { %740 = vadd.xlane.f32.xlu1 %v739_v36 }
 0x1e7   : > { %v1988_v20 = vadd.f32 %v682_v34, %v1832_v22 }
 0x1e8   : > { %v686_v37 = vpop.f32.mrb[16].mxu1 }
 0x1e9   : > { %v687_v38 = vadd.f32 %v1936_v50, %v686_v37  ;;  %v1410_v39 = vpop.f32.mrb[17].mxu1  ;;  %v742_v40 = vsel %vm324_vm1, %v1988_v20, 0.0 }
 0x1ea   : > { %743 = vadd.xlane.f32.xlu0 %v742_v40 }
 0x1eb   : > { %v1994_v21 = vadd.f32 %v687_v38, %v1839_v23 }
 0x1ec   : > { %v691_v41 = vpop.f32.mrb[18].mxu1 }
 0x1ed   : > { %v692_v42 = vadd.f32 %v1936_v50, %v691_v41  ;;  %v1413_v43 = vpop.f32.mrb[19].mxu1  ;;  %v745_v44 = vsel %vm324_vm1, %v1994_v21, 0.0 }
 0x1ee   : > { %746 = vadd.xlane.f32.xlu1 %v745_v44 }
 0x1ef   : > { %v2000_v22 = vadd.f32 %v692_v42, %v1846_v24 }
 0x1f0   : > { %v696_v45 = vpop.f32.mrb[20].mxu1 }
 0x1f1   : > { %v697_v46 = vadd.f32 %v1936_v50, %v696_v45  ;;  %v1416_v47 = vpop.f32.mrb[21].mxu1  ;;  %v748_v48 = vsel %vm324_vm1, %v2000_v22, 0.0 }
 0x1f2   : > { %749 = vadd.xlane.f32.xlu0 %v748_v48 }
 0x1f3   : > { %v2006_v23 = vadd.f32 %v697_v46, %v1853_v25 }
 0x1f4   : > { %v701_v49 = vpop.f32.mrb[22].mxu1 }
 0x1f5   : > { %v702_v51 = vadd.f32 %v1936_v50, %v701_v49  ;;  %v1419_v52 = vpop.f32.mrb[23].mxu1  ;;  %v751_v53 = vsel %vm324_vm1, %v2006_v23, 0.0 }
 0x1f6   : > { %752 = vadd.xlane.f32.xlu1 %v751_v53 }
 0x1f7   : > { %v2012_v24 = vadd.f32 %v702_v51, %v1860_v26 }
 0x1f9   : > { %v754_v54 = vsel %vm324_vm1, %v2012_v24, 0.0 }
 0x1fa   : > { %755 = vadd.xlane.f32.xlu0 %v754_v54 }
 0x257   : > { %v720_v55 = vpop.xlane.xlu0 %719 }
 0x258   : > { %v758_v56 = vmul.f32 0.03125, %v720_v55 }
 0x25a   : > { %v2017_v25 = vsub.f32 %v1940_v33, %v758_v56 }
 0x25b   : > { %v723_v6 = vpop.xlane.xlu0 %722 }
 0x25c   : > { %v759_v58 = vmul.f32 0.03125, %v723_v6  ;;  %v784_v50 = vmul.f32 %v2017_v25, %v2017_v25 }
 0x25e   : > { %v2022_v59 = vsub.f32 %v1946_v57, %v759_v58  ;;  %v797_v26 = vsel %vm324_vm1, %v784_v50, 0.0 }
 0x25f   : > { %v726_v60 = vpop.xlane.xlu1 %725  ;;  %798 = vadd.xlane.f32.xlu1 %v797_v26 }
 0x260   : > { %v760_v61 = vmul.f32 0.03125, %v726_v60  ;;  %v785_v62 = vmul.f32 %v2022_v59, %v2022_v59 }
 0x262   : > { %v2028_v63 = vsub.f32 %v1952_v14, %v760_v61  ;;  %v800_v33 = vsel %vm324_vm1, %v785_v62, 0.0 }
 0x263   : > { %v729_v0 = vpop.xlane.xlu1 %728  ;;  %801 = vadd.xlane.f32.xlu0 %v800_v33 }
 0x264   : > { %v761_v1 = vmul.f32 0.03125, %v729_v0  ;;  %v786_v57 = vmul.f32 %v2028_v63, %v2028_v63 }
 0x266   : > { %v2034_v2 = vsub.f32 %v1958_v15, %v761_v1  ;;  %v803_v3 = vsel %vm324_vm1, %v786_v57, 0.0 }
 0x267   : > { %804 = vadd.xlane.f32.xlu1 %v803_v3  ;;  %v732_v4 = vpop.xlane.xlu0 %731  ;;  %v2097_v3 = vld [vmem:[%s2266_s5] ss:$0 sm:$0xff] }
 0x268   : > { %v762_v5 = vmul.f32 0.03125, %v732_v4  ;;  %v787_v14 = vmul.f32 %v2034_v2, %v2034_v2 }
 0x26a   : > { %v2040_v7 = vsub.f32 %v1964_v16, %v762_v5  ;;  %v806_v8 = vsel %vm324_vm1, %v787_v14, 0.0 }
 0x26b   : > { %v735_v9 = vpop.xlane.xlu1 %734  ;;  %807 = vadd.xlane.f32.xlu0 %v806_v8  ;;  %v2104_v8 = vld [vmem:[%s2267_s6] ss:$0 sm:$0xff] }
 0x26c   : > { %v763_v10 = vmul.f32 0.03125, %v735_v9  ;;  %v788_v15 = vmul.f32 %v2040_v7, %v2040_v7 }
 0x26e   : > { %v2046_v11 = vsub.f32 %v1970_v17, %v763_v10  ;;  %v809_v12 = vsel %vm324_vm1, %v788_v15, 0.0 }
 0x26f   : > { %810 = vadd.xlane.f32.xlu1 %v809_v12  ;;  %v738_v13 = vpop.xlane.xlu0 %737 }
 0x270   : > { %v764_v27 = vmul.f32 0.03125, %v738_v13  ;;  %v789_v16 = vmul.f32 %v2046_v11, %v2046_v11 }
 0x272   : > { %v2052_v28 = vsub.f32 %v1976_v18, %v764_v27  ;;  %v812_v29 = vsel %vm324_vm1, %v789_v16, 0.0 }
 0x273   : > { %v741_v30 = vpop.xlane.xlu1 %740  ;;  %813 = vadd.xlane.f32.xlu0 %v812_v29 }
 0x274   : > { %v765_v31 = vmul.f32 0.03125, %v741_v30  ;;  %v790_v17 = vmul.f32 %v2052_v28, %v2052_v28 }
 0x276   : > { %v2058_v32 = vsub.f32 %v1982_v19, %v765_v31  ;;  %v815_v34 = vsel %vm324_vm1, %v790_v17, 0.0 }
 0x277   : > { %816 = vadd.xlane.f32.xlu1 %v815_v34  ;;  %v744_v35 = vpop.xlane.xlu0 %743 }
 0x278   : > { %v766_v36 = vmul.f32 0.03125, %v744_v35  ;;  %v791_v18 = vmul.f32 %v2058_v32, %v2058_v32 }
 0x27a   : > { %v2064_v37 = vsub.f32 %v1988_v20, %v766_v36  ;;  %v818_v38 = vsel %vm324_vm1, %v791_v18, 0.0 }
 0x27b   : > { %v747_v39 = vpop.xlane.xlu1 %746  ;;  %819 = vadd.xlane.f32.xlu0 %v818_v38 }
 0x27c   : > { %v767_v40 = vmul.f32 0.03125, %v747_v39  ;;  %v792_v19 = vmul.f32 %v2064_v37, %v2064_v37 }
 0x27e   : > { %v2070_v41 = vsub.f32 %v1994_v21, %v767_v40  ;;  %v821_v42 = vsel %vm324_vm1, %v792_v19, 0.0 }
 0x27f   : > { %822 = vadd.xlane.f32.xlu1 %v821_v42  ;;  %v750_v43 = vpop.xlane.xlu0 %749 }
 0x280   : > { %v768_v44 = vmul.f32 0.03125, %v750_v43  ;;  %v793_v20 = vmul.f32 %v2070_v41, %v2070_v41 }
 0x282   : > { %v2076_v45 = vsub.f32 %v2000_v22, %v768_v44  ;;  %v824_v46 = vsel %vm324_vm1, %v793_v20, 0.0 }
 0x283   : > { %v753_v47 = vpop.xlane.xlu1 %752  ;;  %825 = vadd.xlane.f32.xlu0 %v824_v46 }
 0x284   : > { %v769_v48 = vmul.f32 0.03125, %v753_v47  ;;  %v794_v21 = vmul.f32 %v2076_v45, %v2076_v45 }
 0x286   : > { %v2082_v49 = vsub.f32 %v2006_v23, %v769_v48  ;;  %v827_v51 = vsel %vm324_vm1, %v794_v21, 0.0 }
 0x287   : > { %828 = vadd.xlane.f32.xlu1 %v827_v51  ;;  %v756_v52 = vpop.xlane.xlu0 %755 }
 0x288   : > { %v770_v53 = vmul.f32 0.03125, %v756_v52  ;;  %v795_v22 = vmul.f32 %v2082_v49, %v2082_v49 }
 0x28a   : > { %v2088_v54 = vsub.f32 %v2012_v24, %v770_v53  ;;  %v830_v55 = vsel %vm324_vm1, %v795_v22, 0.0 }
 0x28b   : > { %831 = vadd.xlane.f32.xlu0 %v830_v55 }
 0x28c   : > { %v796_v56 = vmul.f32 %v2088_v54, %v2088_v54 }
 0x28e   : > { %v833_v23 = vsel %vm324_vm1, %v796_v56, 0.0 }
 0x28f   : > { %834 = vadd.xlane.f32.xlu1 %v833_v23 }
 0x2ec   : > { %v799_v6 = vpop.xlane.xlu1 %798 }
 0x2ed   : > { %v836_v58 = vmul.f32 0.03125, %v799_v6 }
 0x2ef   : > { %v849_v50 = vadd.f32 1e-05, %v836_v58 }
 0x2f0   : > { %v802_v26 = vpop.xlane.xlu0 %801 }
 0x2f1   : > { %1539 = vrsqrt.f32 %v849_v50  ;;  %v837_v60 = vmul.f32 0.03125, %v802_v26 }
 0x2f3   : > { %v850_v61 = vadd.f32 1e-05, %v837_v60 }
 0x2f4   : > { %v805_v62 = vpop.xlane.xlu1 %804 }
 0x2f5   : > { %1541 = vrsqrt.f32 %v850_v61  ;;  %v838_v24 = vmul.f32 0.03125, %v805_v62 }
 0x2f7   : > { %v851_v33 = vadd.f32 1e-05, %v838_v24 }
 0x2f8   : > { %v808_v0 = vpop.xlane.xlu0 %807 }
 0x2f9   : > { %1543 = vrsqrt.f32 %v851_v33  ;;  %v839_v1 = vmul.f32 0.03125, %v808_v0 }
 0x2fb   : > { %v1540_v57 = vpop.eup %1539  ;;  %v852_v4 = vadd.f32 1e-05, %v839_v1 }
 0x2fc   : > { %v875_v5 = vmul.f32 %v1540_v57, %v2017_v25  ;;  %v811_v14 = vpop.xlane.xlu1 %810 }
 0x2fd   : > { %1545 = vrsqrt.f32 %v852_v4  ;;  %v840_v9 = vmul.f32 0.03125, %v811_v14 }
 0x2fe   : > { %v895_v10 = vmul.f32 %v2097_v3, %v875_v5 }
 0x2ff   : > { %v1542_v15 = vpop.eup %1541  ;;  %v853_v12 = vadd.f32 1e-05, %v840_v9 }
 0x300   : > { %v915_v13 = vadd.f32 %v2104_v8, %v895_v10  ;;  %v876_v27 = vmul.f32 %v1542_v15, %v2022_v59  ;;  %v814_v16 = vpop.xlane.xlu0 %813 }
 0x301   : > { %1547 = vrsqrt.f32 %v853_v12  ;;  %v841_v25 = vmul.f32 0.03125, %v814_v16 }
 0x302   : > { %v928_v29 = vmul.f32 0.01, %v915_v13  ;;  %v896_v30 = vmul.f32 %v2097_v3, %v876_v27 }
 0x303   : > { %v1544_v31 = vpop.eup %1543  ;;  %v854_v17 = vadd.f32 1e-05, %v841_v25 }
 0x304   : > { %v941_v34 = vmax.f32 %v915_v13, %v928_v29  ;;  %v916_v35 = vadd.f32 %v2104_v8, %v896_v30  ;;  %v877_v36 = vmul.f32 %v1544_v31, %v2028_v63  ;;  %v817_v18 = vpop.xlane.xlu1 %816 }
 0x305   : > { %1549 = vrsqrt.f32 %v854_v17  ;;  %v842_v38 = vmul.f32 0.03125, %v817_v18 }
 0x306   : > { %954 = vst.msk [vmem:[%s2112_s24] sm:$0xff] %vm324_vm1, %v941_v34  ;;  %v929_v59 = vmul.f32 0.01, %v916_v35  ;;  %v897_v39 = vmul.f32 %v2097_v3, %v877_v36 }
 0x307   : > { %v1546_v40 = vpop.eup %1545  ;;  %v855_v19 = vadd.f32 1e-05, %v842_v38 }
 0x308   : > { %v942_v42 = vmax.f32 %v916_v35, %v929_v59  ;;  %v917_v43 = vadd.f32 %v2104_v8, %v897_v39  ;;  %v878_v63 = vmul.f32 %v1546_v40, %v2034_v2  ;;  %v820_v44 = vpop.xlane.xlu0 %819 }
 0x309   : > { %1551 = vrsqrt.f32 %v855_v19  ;;  %v843_v20 = vmul.f32 0.03125, %v820_v44 }
 0x30a   : > { %955 = vst.msk [vmem:[%s2112_s24 + $0x8] sm:$0xff] %vm324_vm1, %v942_v42  ;;  %v930_v46 = vmul.f32 0.01, %v917_v43  ;;  %v898_v47 = vmul.f32 %v2097_v3, %v878_v63 }
 0x30b   : > { %v1548_v48 = vpop.eup %1547  ;;  %v856_v21 = vadd.f32 1e-05, %v843_v20 }
 0x30c   : > { %v943_v51 = vmax.f32 %v917_v43, %v930_v46  ;;  %v918_v52 = vadd.f32 %v2104_v8, %v898_v47  ;;  %v879_v53 = vmul.f32 %v1548_v48, %v2040_v7  ;;  %v823_v22 = vpop.xlane.xlu1 %822 }
 0x30d   : > { %1553 = vrsqrt.f32 %v856_v21  ;;  %v844_v55 = vmul.f32 0.03125, %v823_v22 }
 0x30e   : > { %956 = vst.msk [vmem:[%s2112_s24 + $0x10] sm:$0xff] %vm324_vm1, %v943_v51  ;;  %v931_v2 = vmul.f32 0.01, %v918_v52  ;;  %v899_v56 = vmul.f32 %v2097_v3, %v879_v53 }
 0x30f   : > { %v1550_v23 = vpop.eup %1549  ;;  %v857_v6 = vadd.f32 1e-05, %v844_v55 }
 0x310   : > { %v944_v58 = vmax.f32 %v918_v52, %v931_v2  ;;  %v919_v50 = vadd.f32 %v2104_v8, %v899_v56  ;;  %v880_v26 = vmul.f32 %v1550_v23, %v2046_v11  ;;  %v826_v60 = vpop.xlane.xlu0 %825 }
 0x311   : > { %1555 = vrsqrt.f32 %v857_v6  ;;  %v845_v61 = vmul.f32 0.03125, %v826_v60 }
 0x312   : > { %957 = vst.msk [vmem:[%s2112_s24 + $0x18] sm:$0xff] %vm324_vm1, %v944_v58  ;;  %v932_v7 = vmul.f32 0.01, %v919_v50  ;;  %v900_v62 = vmul.f32 %v2097_v3, %v880_v26 }
 0x313   : > { %v1552_v24 = vpop.eup %1551  ;;  %v858_v33 = vadd.f32 1e-05, %v845_v61 }
 0x314   : > { %v945_v0 = vmax.f32 %v919_v50, %v932_v7  ;;  %v920_v1 = vadd.f32 %v2104_v8, %v900_v62  ;;  %v881_v57 = vmul.f32 %v1552_v24, %v2052_v28  ;;  %v829_v4 = vpop.xlane.xlu1 %828 }
 0x315   : > { %1557 = vrsqrt.f32 %v858_v33  ;;  %v846_v5 = vmul.f32 0.03125, %v829_v4 }
 0x316   : > { %958 = vst.msk [vmem:[%s2112_s24 + $0x20] sm:$0xff] %vm324_vm1, %v945_v0  ;;  %v933_v11 = vmul.f32 0.01, %v920_v1  ;;  %v901_v14 = vmul.f32 %v2097_v3, %v881_v57 }
 0x317   : > { %v1554_v9 = vpop.eup %1553  ;;  %v859_v10 = vadd.f32 1e-05, %v846_v5 }
 0x318   : > { %v946_v15 = vmax.f32 %v920_v1, %v933_v11  ;;  %v921_v12 = vadd.f32 %v2104_v8, %v901_v14  ;;  %v882_v13 = vmul.f32 %v1554_v9, %v2058_v32  ;;  %v832_v27 = vpop.xlane.xlu0 %831 }
 0x319   : > { %1559 = vrsqrt.f32 %v859_v10  ;;  %v847_v16 = vmul.f32 0.03125, %v832_v27 }
 0x31a   : > { %959 = vst.msk [vmem:[%s2112_s24 + $0x28] sm:$0xff] %vm324_vm1, %v946_v15  ;;  %v934_v28 = vmul.f32 0.01, %v921_v12  ;;  %v902_v25 = vmul.f32 %v2097_v3, %v882_v13 }
 0x31b   : > { %v1556_v29 = vpop.eup %1555  ;;  %v860_v30 = vadd.f32 1e-05, %v847_v16 }
 0x31c   : > { %v947_v31 = vmax.f32 %v921_v12, %v934_v28  ;;  %v922_v17 = vadd.f32 %v2104_v8, %v902_v25  ;;  %v883_v34 = vmul.f32 %v1556_v29, %v2064_v37  ;;  %v835_v35 = vpop.xlane.xlu1 %834 }
 0x31d   : > { %1561 = vrsqrt.f32 %v860_v30  ;;  %v848_v36 = vmul.f32 0.03125, %v835_v35 }
 0x31e   : > { %960 = vst.msk [vmem:[%s2112_s24 + $0x30] sm:$0xff] %vm324_vm1, %v947_v31  ;;  %v935_v32 = vmul.f32 0.01, %v922_v17  ;;  %v903_v18 = vmul.f32 %v2097_v3, %v883_v34 }
 0x31f   : > { %v1558_v38 = vpop.eup %1557  ;;  %v861_v59 = vadd.f32 1e-05, %v848_v36 }
 0x320   : > { %v948_v39 = vmax.f32 %v922_v17, %v935_v32  ;;  %v923_v40 = vadd.f32 %v2104_v8, %v903_v18  ;;  %v884_v19 = vmul.f32 %v1558_v38, %v2070_v41 }
 0x321   : > { %1563 = vrsqrt.f32 %v861_v59 }
 0x322   : > { %961 = vst.msk [vmem:[%s2112_s24 + $0x38] sm:$0xff] %vm324_vm1, %v948_v39  ;;  %v936_v37 = vmul.f32 0.01, %v923_v40  ;;  %v904_v42 = vmul.f32 %v2097_v3, %v884_v19 }
 0x323   : > { %v1560_v43 = vpop.eup %1559 }
 0x324   : > { %v949_v63 = vmax.f32 %v923_v40, %v936_v37  ;;  %v924_v44 = vadd.f32 %v2104_v8, %v904_v42  ;;  %v885_v20 = vmul.f32 %v1560_v43, %v2076_v45 }
 0x326   : > { %962 = vst.msk [vmem:[%s2112_s24 + $0x40] sm:$0xff] %vm324_vm1, %v949_v63  ;;  %v937_v46 = vmul.f32 0.01, %v924_v44  ;;  %v905_v47 = vmul.f32 %v2097_v3, %v885_v20 }
 0x327   : > { %v1562_v41 = vpop.eup %1561 }
 0x328   : > { %v950_v48 = vmax.f32 %v924_v44, %v937_v46  ;;  %v925_v21 = vadd.f32 %v2104_v8, %v905_v47  ;;  %v886_v51 = vmul.f32 %v1562_v41, %v2082_v49 }
 0x32a   : > { %963 = vst.msk [vmem:[%s2112_s24 + $0x48] sm:$0xff] %vm324_vm1, %v950_v48  ;;  %v938_v52 = vmul.f32 0.01, %v925_v21  ;;  %v906_v53 = vmul.f32 %v2097_v3, %v886_v51 }
 0x32b   : > { %v1564_v22 = vpop.eup %1563 }
 0x32c   : > { %v951_v45 = vmax.f32 %v925_v21, %v938_v52  ;;  %v926_v55 = vadd.f32 %v2104_v8, %v906_v53  ;;  %v887_v2 = vmul.f32 %v1564_v22, %v2088_v54 }
 0x32e   : > { %964 = vst.msk [vmem:[%s2112_s24 + $0x50] sm:$0xff] %vm324_vm1, %v951_v45  ;;  %v939_v56 = vmul.f32 0.01, %v926_v55  ;;  %v907_v23 = vmul.f32 %v2097_v3, %v887_v2 }
 0x330   : > { %v952_v6 = vmax.f32 %v926_v55, %v939_v56  ;;  %v927_v49 = vadd.f32 %v2104_v8, %v907_v23  ;;  %973 = sbr.rel (!%p1725_p4) target bundleno = 884 (0x374), region = 52 }
 0x332   : > { %965 = vst.msk [vmem:[%s2112_s24 + $0x58] sm:$0xff] %vm324_vm1, %v952_v6  ;;  %v940_v58 = vmul.f32 0.01, %v927_v49 }
 0x334   : > { %v953_v50 = vmax.f32 %v927_v49, %v940_v58 }
 0x336   : > { %966 = vst.msk [vmem:[%s2112_s24 + $0x60] sm:$0xff] %vm324_vm1, %v953_v50 }
 0x337   : > { %s2277_s17 = smov (!%p976_p8, %s975_s17), 13 }
 0x338   : > { %s1267_s23 = sshll.u32 %s2277_s17, 7 }
 0x339   : > { %p1270_p9 = scmp.eq.s32.totalorder %s1267_s23, 0 }
 0x33a   : > { %1565 = sdivrem.u32 (!%p1270_p9), %s2277_s17, 13 }
 0x33b   : > { %984 = sbr.rel (%p1270_p9) target bundleno = 884 (0x374), region = 56 }
 0x343   : > { %s2185_s9 = spop.drf %1565 }
 0x344   : > { %p1271_p10 = scmp.le.s32.totalorder %s2185_s9, 0 }
 0x345   : > { %s2270_s27 = smov (!%p1271_p10), %s2179_s22  ;;  %s2271_s18 = smov (!%p1271_p10), %s2112_s24 }
 0x346   : > { %1188 = sbr.rel (%p1271_p10) target bundleno = 855 (0x357), region = 132  ;;  %s2194_s26 = smov (!%p1271_p10), 0  }
 0x347   : > { %s2196_s29 = smov (!%p1271_p10), 0  }
 0x34d LB: >> { %v1072_v54 = vld [vmem:[%s1631_s18] sm:$0xff]  ;;  %v1074_v3 = vld [vmem:[%s1631_s18 + $0x8] sm:$0xff]  ;;  %v1076_v8 = vld [vmem:[%s1631_s18 + $0x10] sm:$0xff]  ;;  %s1098_s30 = sadd.s32 1, %s1635_s26  ;;  %s1066_s29 = sadd.s32 1, %s1639_s29   ;;  %s1639_s29 = sphi %s2196_s29, %s1066_s29   ;;  %s1635_s26 = sphi %s2194_s26, %s2272_s26   ;;  %s1631_s18 = sphi %s2271_s18, %s1103_s18   ;;  %s1627_s27 = sphi %s2270_s27, %s1104_s27  }
 0x34e   : >> { %1073 = vst [vmem:[%s1627_s27] sm:$0xff] %v1072_v54  ;;  %1075 = vst [vmem:[%s1627_s27 + $0x8] sm:$0xff] %v1074_v3  ;;  %v1078_v26 = vld [vmem:[%s1631_s18 + $0x18] sm:$0xff]  ;;  %v1080_v60 = vld [vmem:[%s1631_s18 + $0x20] sm:$0xff]  ;;  %p1099_p11 = scmp.ge.s32.totalorder %s1098_s30, %s2185_s9  ;;  %p1065_p12 = scmp.ge.s32.totalorder %s1066_s29, %s2185_s9 }
 0x34f   : >> { %1077 = vst [vmem:[%s1627_s27 + $0x10] sm:$0xff] %v1076_v8  ;;  %v1082_v61 = vld [vmem:[%s1631_s18 + $0x28] sm:$0xff]  ;;  %1079 = vst [vmem:[%s1627_s27 + $0x18] sm:$0xff] %v1078_v26  ;;  %v1084_v7 = vld [vmem:[%s1631_s18 + $0x30] sm:$0xff] }
 0x350   : >> { %1081 = vst [vmem:[%s1627_s27 + $0x20] sm:$0xff] %v1080_v60  ;;  %1083 = vst [vmem:[%s1627_s27 + $0x28] sm:$0xff] %v1082_v61  ;;  %v1086_v62 = vld [vmem:[%s1631_s18 + $0x38] sm:$0xff]  ;;  %v1088_v24 = vld [vmem:[%s1631_s18 + $0x40] sm:$0xff]  ;;  %s2279_s30 = smov (%p1099_p11, %s1098_s30), 0  ;;  %1068 = sbr.rel (!%p1065_p12) target bundleno = 845 (0x34d), region = 138 }
 0x351   : >> { %1085 = vst [vmem:[%s1627_s27 + $0x30] sm:$0xff] %v1084_v7  ;;  %1087 = vst [vmem:[%s1627_s27 + $0x38] sm:$0xff] %v1086_v62  ;;  %v1090_v33 = vld [vmem:[%s1631_s18 + $0x48] sm:$0xff]  ;;  %v1092_v0 = vld [vmem:[%s1631_s18 + $0x50] sm:$0xff]  ;;  %s1101_s10 = smul.u32 104, %s2279_s30  ;;  %s2272_s26 = smov %s2279_s30 }
 0x352   : >> { %1089 = vst [vmem:[%s1627_s27 + $0x40] sm:$0xff] %v1088_v24  ;;  %v1094_v1 = vld [vmem:[%s1631_s18 + $0x58] sm:$0xff]  ;;  %1091 = vst [vmem:[%s1627_s27 + $0x48] sm:$0xff] %v1090_v33  ;;  %v1096_v57 = vld [vmem:[%s1631_s18 + $0x60] sm:$0xff] }
 0x353   : >> { %1093 = vst [vmem:[%s1627_s27 + $0x50] sm:$0xff] %v1092_v0  ;;  %1095 = vst [vmem:[%s1627_s27 + $0x58] sm:$0xff] %v1094_v1  ;;  %s1103_s18 = scalar_lea.vmem %s2112_s24, %s1101_s10 [#allocation2]  }
 0x354   : >> { %1097 = vst [vmem:[%s1627_s27 + $0x60] sm:$0xff] %v1096_v57  ;;  %s1104_s27 = scalar_lea.vmem %s2179_s22, %s1101_s10  }
 0x357 PF: > { %1567 = sdivrem.u32 %s2277_s17, 13 }
 0x358   : > { %s1272_s11 = smul.u32 104, %s2185_s9 }
 0x35a   : > { %s1109_s12 = scalar_lea.vmem %s2112_s24, %s1272_s11 [#allocation2]   ;;  %s1111_s13 = scalar_lea.vmem %s2179_s22, %s1272_s11  }
 0x360   : > { %s1568_s14 = spop.drf %1567 }
 0x361   : > { %p1274_p13 = scmp.le.s32.totalorder %s1568_s14, 0 }
 0x362   : > { %s1641_s15 = smov (!%p1274_p13), %s1111_s13   ;;  %s1645_s16 = smov (!%p1274_p13), %s1109_s12  }
 0x363   : > { %1202 = sbr.rel (%p1274_p13) target bundleno = 884 (0x374), region = 143  ;;  %s1649_s19 = smov (!%p1274_p13), 0  }
 0x364   : > { %s1653_s20 = smov (!%p1274_p13), 0  }
 0x36a LB: >> { %v1121_v4 = vld [vmem:[%s1647_s16] sm:$0xff]  ;;  %s1123_s21 = sadd.s32 1, %s1651_s19  ;;  %s1115_s20 = sadd.s32 1, %s1655_s20   ;;  %s1655_s20 = sphi %s1653_s20, %s1115_s20   ;;  %s1651_s19 = sphi %s1649_s19, %s1650_s19   ;;  %s1647_s16 = sphi %s1645_s16, %s1128_s16   ;;  %s1643_s15 = sphi %s1641_s15, %s1129_s15  }
 0x36b   : >> { %1122 = vst [vmem:[%s1643_s15] sm:$0xff] %v1121_v4  ;;  %p1124_p0 = scmp.ge.s32.totalorder %s1123_s21, %s1568_s14  ;;  %p1114_p1 = scmp.ge.s32.totalorder %s1115_s20, %s1568_s14 }
 0x36d   : >> { %s2281_s21 = smov (%p1124_p0, %s1123_s21), 0  ;;  %1117 = sbr.rel (!%p1114_p1) target bundleno = 874 (0x36a), region = 149 }
 0x36e   : >> { %s1275_s24 = sshll.u32 %s2281_s21, 3  ;;  %s1650_s19 = smov %s2281_s21  }
 0x36f   : >> { %s1128_s16 = scalar_lea.vmem %s1109_s12, %s1275_s24 [#allocation2]   ;;  %s1129_s15 = scalar_lea.vmem %s1111_s13, %s1275_s24  }
 0x374 PF: > { %p14_p2 = scmp.ge.s32.totalorder %s1715_s28, 4   ;;  %s2273_s24 = smov %s1619_s25 }
 0x375   : > { %s2274_s25 = smov %s1723_s8  ;;  %s2275_s26 = smov %s1715_s28 }
 0x376   :  { %16 = sbr.rel (!%p14_p2) target bundleno = 2 (0x2), region = 160 }

</bundles_post_ra>
